<compile_context>
chip_gen: v7x
topology: tpu7x:2x2x1
jax: 0.10.0
libtpu: 0.0.40
codegen_flags: <defaults>
</compile_context>

<pallas_src>
import jax
import jax.numpy as jnp
from jax.experimental import pallas as pl
from jax.experimental.pallas import tpu as pltpu


def linear_tanh_kernel(x_ref, wt_ref, b_ref, o_ref):
    # x_ref: (B, 3), wt_ref: (3, OUT), b_ref: (1, OUT), o_ref: (B, OUT)
    x = x_ref[...]
    wt = wt_ref[...]
    b = b_ref[...]
    # Unrolled VPU contraction over the 3 input features; bias folded into the sum.
    acc = (x[:, 0:1] * wt[0:1, :]
           + x[:, 1:2] * wt[1:2, :]
           + x[:, 2:3] * wt[2:3, :]
           + b)
    # tanh goes to the EUP (separate bundle slot).
    o_ref[...] = jnp.tanh(acc).astype(o_ref.dtype)


def linear_tanh(x, wt, b2):
    """x: (B, 3) f32, wt: (3, OUT) f32 (pre-transposed), b2: (1, OUT) f32 (pre-reshaped)."""
    B = x.shape[0]
    OUT = wt.shape[1]
    return pl.pallas_call(
        linear_tanh_kernel,
        out_shape=jax.ShapeDtypeStruct((B, OUT), jnp.float32),
        in_specs=[
            pl.BlockSpec(memory_space=pltpu.MemorySpace.VMEM),  # x  (whole array)
            pl.BlockSpec(memory_space=pltpu.MemorySpace.VMEM),  # wt (whole array)
            pl.BlockSpec(memory_space=pltpu.MemorySpace.VMEM),  # bias (whole array)
        ],
        out_specs=pl.BlockSpec(memory_space=pltpu.MemorySpace.VMEM),
    )(x, wt, b2)


if __name__ == "__main__":
    key = jax.random.PRNGKey(0)
    kx, kw, kb = jax.random.split(key, 3)

    IN_FEATURES, OUT_FEATURES = 3, 8
    BATCH = 1

    # Deterministic parameter init mimicking torch.nn.Linear default
    # (uniform in [-1/sqrt(in_features), 1/sqrt(in_features)]).
    bound = 1.0 / jnp.sqrt(jnp.float32(IN_FEATURES))
    weight = jax.random.uniform(
        kw, (OUT_FEATURES, IN_FEATURES), jnp.float32, -bound, bound)
    bias = jax.random.uniform(
        kb, (OUT_FEATURES,), jnp.float32, -bound, bound)

    # One-time parameter prep (hoisted out of the per-call wrapper):
    wt = jnp.asarray(weight.T)                 # (IN, OUT)
    b2 = jnp.asarray(bias.reshape(1, OUT_FEATURES))  # (1, OUT)

    # Input: x2 = torch.randn(1, 3)
    x2 = jax.random.normal(kx, (BATCH, IN_FEATURES), jnp.float32)

    out = linear_tanh(x2, wt, b2)
    out = jax.block_until_ready(out)

    # Pure-JAX reference check (original PyTorch semantics).
    ref = jnp.tanh(x2 @ weight.T + bias)
    assert out.shape == (BATCH, OUT_FEATURES)
    assert jnp.allclose(out, ref, atol=1e-5, rtol=1e-5)

    print("KERNEL_OK")
</pallas_src>

<mosaic_0001>
module attributes {stable_mosaic.version = 11 : i64} {
  func.func @linear_tanh_kernel(%arg0: memref<1x3xf32, #tpu.memory_space<vmem>>, %arg1: memref<3x8xf32, #tpu.memory_space<vmem>>, %arg2: memref<1x8xf32, #tpu.memory_space<vmem>>, %arg3: memref<1x8xf32, #tpu.memory_space<vmem>>) attributes {dimension_semantics = [], scalar_prefetch = 0 : i64, scratch_operands = 0 : i64, tpu.core_type = #tpu.core_type<tc>} {
    %c0 = arith.constant 0 : index
    %c0_0 = arith.constant 0 : index
    %0 = vector.load %arg0[%c0, %c0_0] : memref<1x3xf32, #tpu.memory_space<vmem>>, vector<1x3xf32>
    %c0_1 = arith.constant 0 : index
    %c0_2 = arith.constant 0 : index
    %1 = vector.load %arg1[%c0_1, %c0_2] : memref<3x8xf32, #tpu.memory_space<vmem>>, vector<3x8xf32>
    %c0_3 = arith.constant 0 : index
    %c0_4 = arith.constant 0 : index
    %2 = vector.load %arg2[%c0_3, %c0_4] : memref<1x8xf32, #tpu.memory_space<vmem>>, vector<1x8xf32>
    %3 = vector.extract_strided_slice %0 {offsets = [0, 0], sizes = [1, 1], strides = [1, 1]} : vector<1x3xf32> to vector<1x1xf32>
    %4 = vector.extract_strided_slice %1 {offsets = [0, 0], sizes = [1, 8], strides = [1, 1]} : vector<3x8xf32> to vector<1x8xf32>
    %5 = vector.broadcast %3 : vector<1x1xf32> to vector<1x8xf32>
    %6 = arith.mulf %5, %4 : vector<1x8xf32>
    %7 = vector.extract_strided_slice %0 {offsets = [0, 1], sizes = [1, 1], strides = [1, 1]} : vector<1x3xf32> to vector<1x1xf32>
    %8 = vector.extract_strided_slice %1 {offsets = [1, 0], sizes = [1, 8], strides = [1, 1]} : vector<3x8xf32> to vector<1x8xf32>
    %9 = vector.broadcast %7 : vector<1x1xf32> to vector<1x8xf32>
    %10 = arith.mulf %9, %8 : vector<1x8xf32>
    %11 = arith.addf %6, %10 : vector<1x8xf32>
    %12 = vector.extract_strided_slice %0 {offsets = [0, 2], sizes = [1, 1], strides = [1, 1]} : vector<1x3xf32> to vector<1x1xf32>
    %13 = vector.extract_strided_slice %1 {offsets = [2, 0], sizes = [1, 8], strides = [1, 1]} : vector<3x8xf32> to vector<1x8xf32>
    %14 = vector.broadcast %12 : vector<1x1xf32> to vector<1x8xf32>
    %15 = arith.mulf %14, %13 : vector<1x8xf32>
    %16 = arith.addf %11, %15 : vector<1x8xf32>
    %17 = arith.addf %16, %2 : vector<1x8xf32>
    %18 = math.tanh %17 : vector<1x8xf32>
    %c0_5 = arith.constant 0 : index
    %c0_6 = arith.constant 0 : index
    %19 = vector.load %arg3[%c0_5, %c0_6] : memref<1x8xf32, #tpu.memory_space<vmem>>, vector<1x8xf32>
    tpu.vector_store %arg3[%c0_5, %c0_6], %18 {strides = array<i32>} : memref<1x8xf32, #tpu.memory_space<vmem>>, vector<1x8xf32>,
    return
  }
}

</mosaic_0001>

<bundles_post_ra>
// kernel: tpu_custom_call.1
= control target key start
LH: loop header
LB: loop body
LE: loop exit
PB: predicated region body
PF: predicated region fallthrough
CT: control target
= control target key end

     0   :  { %8 = vsyncpa [#allocation3], 0  ;;  %s247_s0 = inlined_call_operand.hbm [shape: f32[1,3], index: 0, kind: input, shape index: {}]   ;;  %s248_s1 = inlined_call_operand.hbm [shape: f32[3,8], index: 1, kind: input, shape index: {}]   ;;  %s249_s2 = inlined_call_operand.vmem [shape: f32[1,8], index: 2, kind: input, shape index: {}]   ;;  %s250_s3 = inlined_call_operand.hbm [shape: f32[1,8], index: 3, kind: output, shape index: {}]  }
   0x1   :  { %9 = vsyncpa [#allocation6], 0 }
   0x2   :  { %10 = vsyncpa [#allocation4], 0  ;;  %s182_s12 = smov [#allocation2]   ;;  %s183_s14 = smov [#allocation5]  }
   0x3   :  { %s17_s13 = sshll.u32 %s182_s12, 4  ;;  %s27_s15 = sshll.u32 %s183_s14, 4  ;;  %s18_s13 = int_to_ptr.vmem [resolvable:$true] %s17_s13  ;;  %s28_s15 = int_to_ptr.vmem [resolvable:$true] %s27_s15 }
   0x4   :  { %s110_s18 = scalar_lea.hbm %s247_s0, 16 }
   0x5   :  { %p111_p0 = scmp.ne.s32.totalorder %s247_s0, %s110_s18  ;;  %p114_p1 = scmp.lt.u32.totalorder %s110_s18, %s247_s0 }
   0x7   :  { %p116_p2 = pnand %p114_p1, %p111_p0 }
   0x9   :  { %119 = shalt.err (!%p116_p2)
}
   0xa   :  { %s120_s23 = scalar_lea.vmem %s18_s13, 16  ;;  %s124_s24 = scalar_lea.vmem %s18_s13, 32 }
   0xb   :  { %p121_p3 = scmp.ne.s32.totalorder %s18_s13, %s120_s23  ;;  %p125_p4 = scmp.lt.s32.totalorder %s18_s13, %s18_s13 }
   0xc   :  { %p126_p5 = scmp.lt.s32.totalorder %s124_s24, %s120_s23 }
   0xe   :  { %p127_p6 = por %p126_p5, %p125_p4 }
  0x10   :  { %p128_p7 = pnand %p127_p6, %p121_p3 }
  0x12   :  { %131 = shalt.err (!%p128_p7)
}
  0x13   :  { %20 = dma.hbm_to_vmem [thread:$0]  %s247_s0, 16, %s18_s13, [#allocation3]  }
  0x14   :  { %s132_s29 = scalar_lea.hbm %s248_s1, 64 }
  0x15   :  { %p133_p8 = scmp.ne.s32.totalorder %s248_s1, %s132_s29  ;;  %p136_p9 = scmp.lt.u32.totalorder %s132_s29, %s248_s1 }
  0x17   :  { %p138_p10 = pnand %p136_p9, %p133_p8 }
  0x19   :  { %141 = shalt.err (!%p138_p10)
}
  0x1a   :  { %s142_s7 = scalar_lea.vmem %s28_s15, 64  ;;  %p147_p12 = scmp.lt.s32.totalorder %s28_s15, %s28_s15 }
  0x1b   :  { %p143_p11 = scmp.ne.s32.totalorder %s28_s15, %s142_s7  ;;  %p148_p13 = scmp.lt.s32.totalorder %s142_s7, %s142_s7 }
  0x1d   :  { %p149_p0 = por %p148_p13, %p147_p12 }
  0x1f   :  { %p150_p1 = pnand %p149_p0, %p143_p11 }
  0x21   :  { %153 = shalt.err (!%p150_p1)
}
  0x22   :  { %30 = dma.hbm_to_vmem [thread:$0]  %s248_s1, 64, %s28_s15, [#allocation6]  }
  0x23   :  { %176 = dma.done.wait [#allocation3], 16  }
  0x24   :  { %177 = vsyncadd [#allocation3], 4294967280 }
  0x25   :  { %178 = dma.done.wait [#allocation6], 64  }
  0x26   :  { %179 = vsyncadd [#allocation6], 4294967232  ;;  %v184_v0 = vmov 1   ;;  %v185_v1 = vmov 2   ;;  %v39_v2 = vld [vmem:[#allocation2] sm:$0x1]  ;;  %v47_v4 = vlaneseq }
  0x27   :  { %104 = vset.pattern.permute.xlu0 %v184_v0  ;;  %106 = vset.pattern.permute.xlu1 %v185_v1  ;;  %v186_v3 = vmov 0   ;;  %v40_v9 = vld [vmem:[#allocation5] sm:$0x7]  ;;  %v41_v20 = vld [vmem:[%s249_s2] sm:$0x1]  ;;  %s187_s10 = smov [#allocation7]  }
  0x28   :  { %53 = vperm.xlu0 %104, %v39_v2   ;;  %66 = vperm.xlu1 %106, %v39_v2   ;;  %v48_v5 = vshrl.u32 %v47_v4, 7  ;;  %s88_s11 = sshll.u32 %s187_s10, 4  ;;  %vm80_vm0 = vcmask 57344   ;;  %s89_s11 = int_to_ptr.vmem [resolvable:$true] %s88_s11 }
  0x29   :  { %s154_s12 = scalar_lea.vmem %s89_s11, 16  ;;  %s158_s13 = scalar_lea.vmem %s89_s11, 32 }
  0x2a   :  { %v49_v6 = vsub.s32 0, %v48_v5  ;;  %p155_p2 = scmp.ne.s32.totalorder %s89_s11, %s154_s12  ;;  %p159_p3 = scmp.lt.s32.totalorder %s89_s11, %s89_s11 }
  0x2b   :  { %p160_p4 = scmp.lt.s32.totalorder %s158_s13, %s154_s12 }
  0x2c   :  { %105 = vset.pattern.permute.xlu0 %v186_v3 }
  0x2d   :  { %44 = vperm.xlu0 %105, %v39_v2   ;;  %p161_p5 = por %p160_p4, %p159_p3 }
  0x2f   :  { %p162_p6 = pnand %p161_p5, %p155_p2 }
  0x31   :  { %107 = vset.pattern.permute.xlu0 %v185_v1 }
  0xa7   :  { %v54_v7 = vpop.permute.xlu0 %53  ;;  %v67_v8 = vpop.permute.xlu1 %66 }
  0xa8   :  { %v59_v10 = vrot.slane %v54_v7, %v49_v6  ;;  %v72_v11 = vrot.slane %v67_v8, %v49_v6 }
  0xaa   :  { %v60_v12 = vmul.f32 %v59_v10, %v40_v9  ;;  %v73_v13 = vmul.f32 %v72_v11, %v40_v9 }
  0xac   :  { %v45_v14 = vpop.permute.xlu0 %44  ;;  %v62_v16 = vrot.slane %v60_v12, 1  ;;  %v75_v17 = vrot.slane %v73_v13, 2 }
  0xad   :  { %v50_v15 = vrot.slane %v45_v14, %v49_v6 }
  0xaf   :  { %v51_v18 = vmul.f32 %v50_v15, %v40_v9 }
  0xb1   :  { %v64_v19 = vadd.f32 %v62_v16, %v51_v18 }
  0xb3   :  { %v77_v21 = vadd.f32 %v75_v17, %v64_v19 }
  0xb5   :  { %v78_v22 = vadd.f32 %v77_v21, %v41_v20 }
  0xb7   :  { %108 = vtanh.f32 %v78_v22 }
  0xc1   :  { %v109_v23 = vpop.eup %108 }
  0xc2   :  { %81 = vst.msk [vmem:[#allocation7] sm:$0x1] %vm80_vm0, %v109_v23 }
  0xc3   :  { %165 = shalt.err (!%p162_p6)
}
  0xc4   :  { %s166_s2 = scalar_lea.hbm %s250_s3, 16 }
  0xc5   :  { %p167_p7 = scmp.ne.s32.totalorder %s250_s3, %s166_s2  ;;  %p170_p8 = scmp.lt.u32.totalorder %s166_s2, %s250_s3 }
  0xc7   :  { %p172_p9 = pnand %p170_p8, %p167_p7 }
  0xc9   :  { %175 = shalt.err (!%p172_p9)
}
  0xca   :  { %91 = dma.vmem_to_hbm [thread:$0]  %s89_s11, 16, %s250_s3, [#allocation4]  }
  0xcb   :  { %180 = dma.done.wait [#allocation4], 16  }
  0xcc   :  { %181 = vsyncadd [#allocation4], 4294967280 }
  0xcd   :  { %95 = vsyncpa [#allocation3], 1 }
  0xce   :  { %96 = vsyncpa [#allocation6], 1 }
  0xcf   :  { %97 = vsyncpa [#allocation4], 1 }

</bundles_post_ra>
